<compile_context>
chip_gen: v5e
topology: v5e:2x2
jax: 0.10.0
libtpu: 0.0.40
codegen_flags: <defaults>
</compile_context>

<pallas_src>
import math

import jax
import jax.numpy as jnp
from jax.experimental import pallas as pl
from jax.experimental.pallas import tpu as pltpu

# ----------------------------- small synthetic ALBERT config -----------------------------
VOCAB_SIZE = 100
MAX_POS = 32
TYPE_VOCAB = 2
EMB_SIZE = 16          # ALBERT factorized embedding size
HIDDEN = 32            # hidden size
NUM_HEADS = 2
HEAD_DIM = HIDDEN // NUM_HEADS
INTERMEDIATE = 64
NUM_LAYERS = 2         # shared layer applied NUM_LAYERS times
NUM_CLASSES = 4
LN_EPS = 1e-12

BATCH = 2
SEQ = 8

OUT_LANES = 128        # packed-output lane width (lane-dense store)

# rows of the packed small-parameter slab (each row padded to 128 lanes)
ROW_EMB_LN_G, ROW_EMB_LN_B = 0, 1
ROW_EMB_MAP_B = 2
ROW_BQKV = 3
ROW_BO = 4
ROW_LN1_G, ROW_LN1_B = 5, 6
ROW_BF = 7
ROW_BFO = 8
ROW_LN2_G, ROW_LN2_B = 9, 10
ROW_CLF_B = 11
N_SMALL_ROWS = 12


# ----------------------------- in-kernel math helpers -----------------------------
def _layer_norm(x, gamma, beta, eps=LN_EPS):
    mu = jnp.mean(x, axis=-1, keepdims=True)
    var = jnp.mean((x - mu) ** 2, axis=-1, keepdims=True)
    return (x - mu) * jax.lax.rsqrt(var + eps) * gamma + beta


def _gelu_new(x):
    # HuggingFace "gelu_new" (tanh approximation), ALBERT's hidden_act
    c = 0.7978845608028654  # sqrt(2/pi)
    return 0.5 * x * (1.0 + jnp.tanh(c * (x + 0.044715 * x * x * x)))


# ----------------------------- fused Pallas kernel (one batch element per grid step) ----
def text_albert_kernel(emb_ref, mask_ref, small_ref,
                       emb_w_ref, wqkv_ref, wo_ref, wf_ref, wfo_ref, clf_w_ref,
                       out_ref):
    f32, bf16 = jnp.float32, jnp.bfloat16
    S = emb_ref.shape[1]
    E = emb_ref.shape[2]
    H, NH, HD, I, C = HIDDEN, NUM_HEADS, HEAD_DIM, INTERMEDIATE, NUM_CLASSES

    # ---- unpack the small-parameter slab (static prefix slices, no broadcasts) ----
    sv = small_ref[...]                                   # (N_SMALL_ROWS, 128) f32
    emb_ln_g = sv[ROW_EMB_LN_G:ROW_EMB_LN_G + 1, :E]
    emb_ln_b = sv[ROW_EMB_LN_B:ROW_EMB_LN_B + 1, :E]
    emb_map_b = sv[ROW_EMB_MAP_B:ROW_EMB_MAP_B + 1, :H]
    bqkv = sv[ROW_BQKV:ROW_BQKV + 1, :3 * H]
    bo = sv[ROW_BO:ROW_BO + 1, :H]
    ln1_g = sv[ROW_LN1_G:ROW_LN1_G + 1, :H]
    ln1_b = sv[ROW_LN1_B:ROW_LN1_B + 1, :H]
    b_ffn = sv[ROW_BF:ROW_BF + 1, :I]
    bfo = sv[ROW_BFO:ROW_BFO + 1, :H]
    ln2_g = sv[ROW_LN2_G:ROW_LN2_G + 1, :H]
    ln2_b = sv[ROW_LN2_B:ROW_LN2_B + 1, :H]
    clf_b = sv[ROW_CLF_B:ROW_CLF_B + 1, :C]

    mask = mask_ref[0]                                    # (1, S) additive mask

    # ---- embeddings: LayerNorm + embedding_hidden_mapping_in ----
    e = _layer_norm(emb_ref[0], emb_ln_g, emb_ln_b)       # (S, E) f32
    h = jnp.dot(e.astype(bf16), emb_w_ref[...],
                preferred_element_type=f32) + emb_map_b   # (S, H) f32

    wqkv = wqkv_ref[...]                                  # (H, 3H) bf16
    wo = wo_ref[...]                                      # (H, H)  bf16
    wf = wf_ref[...]                                      # (H, I)  bf16
    wfo = wfo_ref[...]                                    # (I, H)  bf16
    scale = 1.0 / math.sqrt(HD)

    # ALBERT parameter sharing: the SAME weights are applied NUM_LAYERS times.
    for _ in range(NUM_LAYERS):
        hb = h.astype(bf16)

        # Fused QKV projection: single (S,H)x(H,3H) MXU op + (1,3H) bias.
        qkv = jnp.dot(hb, wqkv, preferred_element_type=f32) + bqkv   # (S, 3H) f32
        qkv_b = qkv.astype(bf16)

        # Per-head attention (NH=2 static iterations; each score/context matmul
        # is a forced-size MXU push either way, so no batched-einsum relayouts).
        ctx_heads = []
        for n in range(NH):
            qn = qkv_b[:, n * HD:(n + 1) * HD]                       # (S, HD)
            kn = qkv_b[:, H + n * HD:H + (n + 1) * HD]
            vn = qkv_b[:, 2 * H + n * HD:2 * H + (n + 1) * HD]
            s = jnp.einsum('qd,kd->qk', qn, kn,
                           preferred_element_type=f32) * scale + mask  # (S, S) f32
            m = jnp.max(s, axis=-1, keepdims=True)
            p = jnp.exp(s - m)
            p = p * pl.reciprocal(jnp.sum(p, axis=-1, keepdims=True), approx=True)
            ctx_heads.append(jnp.dot(p.astype(bf16), vn,
                                     preferred_element_type=f32))    # (S, HD)
        ctx = jnp.concatenate(ctx_heads, axis=-1)                    # (S, H) f32

        # Attention output projection: single lane-dense (S,H)x(H,H) matmul.
        proj = jnp.dot(ctx.astype(bf16), wo, preferred_element_type=f32) + bo
        att = _layer_norm(h + proj, ln1_g, ln1_b)

        # FFN with gelu_new (f32 elementwise math; bf16 only on MXU operands).
        ffn = _gelu_new(jnp.dot(att.astype(bf16), wf,
                                preferred_element_type=f32) + b_ffn)
        ffn_out = jnp.dot(ffn.astype(bf16), wfo,
                          preferred_element_type=f32) + bfo
        h = _layer_norm(att + ffn_out, ln2_g, ln2_b)

    # ---- CLS token (row 0 of this batch's block) + classifier ----
    cls = h[0:1, :]                                                   # (1, H)
    logits = jnp.dot(cls.astype(bf16), clf_w_ref[...],
                     preferred_element_type=f32) + clf_b              # (1, C)

    # Pack pooler + logits into one lane-dense 128-wide row: [0:H]=CLS, [H:H+C]=logits.
    packed = jnp.concatenate(
        [cls, logits, jnp.zeros((1, OUT_LANES - H - C), f32)], axis=-1)
    out_ref[...] = packed.reshape(1, 1, OUT_LANES)


# ----------------------------- parameter construction -----------------------------
def init_params(key):
    # TODO(synk): AlbertModel.from_pretrained('./models/albert-base-v2/') weight
    # loading has no Pallas equivalent here; a randomly-initialized toy-sized
    # config is used instead.
    ks = jax.random.split(key, 16)
    std = 0.02

    def nrm(k, shape):
        return jax.random.normal(k, shape, dtype=jnp.float32) * std

    params = {
        'word_emb': nrm(ks[0], (VOCAB_SIZE, EMB_SIZE)),
        'pos_emb': nrm(ks[1], (MAX_POS, EMB_SIZE)),
        'type_emb': nrm(ks[2], (TYPE_VOCAB, EMB_SIZE)),
        'emb_ln_g': jnp.ones((1, EMB_SIZE), jnp.float32),
        'emb_ln_b': jnp.zeros((1, EMB_SIZE), jnp.float32),
        'emb_map_w': nrm(ks[3], (EMB_SIZE, HIDDEN)),
        'emb_map_b': jnp.zeros((1, HIDDEN), jnp.float32),
        # shared transformer layer (ALBERT reuses these for every layer)
        'wq': nrm(ks[4], (HIDDEN, HIDDEN)), 'bq': jnp.zeros((1, HIDDEN), jnp.float32),
        'wk': nrm(ks[5], (HIDDEN, HIDDEN)), 'bk': jnp.zeros((1, HIDDEN), jnp.float32),
        'wv': nrm(ks[6], (HIDDEN, HIDDEN)), 'bv': jnp.zeros((1, HIDDEN), jnp.float32),
        'wo': nrm(ks[7], (HIDDEN, HIDDEN)), 'bo': jnp.zeros((1, HIDDEN), jnp.float32),
        'ln1_g': jnp.ones((1, HIDDEN), jnp.float32),
        'ln1_b': jnp.zeros((1, HIDDEN), jnp.float32),
        'wf': nrm(ks[8], (HIDDEN, INTERMEDIATE)),
        'bf': jnp.zeros((1, INTERMEDIATE), jnp.float32),
        'wfo': nrm(ks[9], (INTERMEDIATE, HIDDEN)),
        'bfo': jnp.zeros((1, HIDDEN), jnp.float32),
        'ln2_g': jnp.ones((1, HIDDEN), jnp.float32),
        'ln2_b': jnp.zeros((1, HIDDEN), jnp.float32),
        # classifier head
        'clf_w': nrm(ks[10], (HIDDEN, NUM_CLASSES)),
        'clf_b': jnp.zeros((1, NUM_CLASSES), jnp.float32),
    }
    return params


# ----------------------------- forward pass -----------------------------
def _pad_row(v, width=OUT_LANES):
    v = v.reshape(1, -1).astype(jnp.float32)
    return jnp.pad(v, ((0, 0), (0, width - v.shape[-1])))


@jax.jit
def text_albert_forward(params, input_ids, attention_mask):
    B, S = input_ids.shape
    bf16 = jnp.bfloat16

    # --- embedding gather (glue, plain JAX); token_type_ids = 0 ---
    we = params['word_emb'][input_ids]                    # (B, S, E)
    pe = params['pos_emb'][:S][None, :, :]                # (1, S, E)
    te = params['type_emb'][0][None, None, :]             # (1, 1, E)
    emb = we + pe + te                                    # (B, S, E) f32

    # additive extended attention mask, kept small: (B, 1, S)
    mask_add = ((1.0 - attention_mask.astype(jnp.float32)) * -10000.0).reshape(B, 1, S)

    # --- wrapper-side layout plumbing (free at trace time) ---
    # fused QKV weight (H, 3H); head n occupies columns [n*HD:(n+1)*HD] of each block
    wqkv = jnp.concatenate([params['wq'], params['wk'], params['wv']],
                           axis=1).astype(bf16)           # (H, 3H)
    emb_w = params['emb_map_w'].astype(bf16)              # (E, H)
    wo = params['wo'].astype(bf16)                        # (H, H)
    wf = params['wf'].astype(bf16)                        # (H, I)
    wfo = params['wfo'].astype(bf16)                      # (I, H)
    clf_w = params['clf_w'].astype(bf16)                  # (H, C)

    # pack all tiny (1,k) params into one (12, 128) f32 slab -> single DMA
    bqkv = jnp.concatenate([params['bq'], params['bk'], params['bv']], axis=1)  # (1, 3H)
    small = jnp.concatenate([
        _pad_row(params['emb_ln_g']), _pad_row(params['emb_ln_b']),
        _pad_row(params['emb_map_b']),
        _pad_row(bqkv),
        _pad_row(params['bo']),
        _pad_row(params['ln1_g']), _pad_row(params['ln1_b']),
        _pad_row(params['bf']),
        _pad_row(params['bfo']),
        _pad_row(params['ln2_g']), _pad_row(params['ln2_b']),
        _pad_row(params['clf_b']),
    ], axis=0)                                            # (N_SMALL_ROWS, 128)

    const = lambda b: (0, 0)                              # shared weights: DMA'd once
    out = pl.pallas_call(
        text_albert_kernel,
        out_shape=jax.ShapeDtypeStruct((B, 1, OUT_LANES), jnp.float32),
        grid=(B,),
        in_specs=[
            pl.BlockSpec((1, S, EMB_SIZE), lambda b: (b, 0, 0)),       # embeddings
            pl.BlockSpec((1, 1, S), lambda b: (b, 0, 0)),              # additive mask
            pl.BlockSpec((N_SMALL_ROWS, OUT_LANES), const),            # small-param slab
            pl.BlockSpec((EMB_SIZE, HIDDEN), const),                   # emb->hidden W
            pl.BlockSpec((HIDDEN, 3 * HIDDEN), const),                 # fused QKV W
            pl.BlockSpec((HIDDEN, HIDDEN), const),                     # attn out W
            pl.BlockSpec((HIDDEN, INTERMEDIATE), const),               # FFN W
            pl.BlockSpec((INTERMEDIATE, HIDDEN), const),               # FFN out W
            pl.BlockSpec((HIDDEN, NUM_CLASSES), const),                # classifier W
        ],
        out_specs=pl.BlockSpec((1, 1, OUT_LANES), lambda b: (b, 0, 0)),
        compiler_params=pltpu.CompilerParams(
            dimension_semantics=("parallel",)),            # shards batch across v7x TCs
    )(emb, mask_add, small, emb_w, wqkv, wo, wf, wfo, clf_w)

    pooler = out[:, 0, 0:HIDDEN]                          # raw CLS last_hidden_state row
    logits = out[:, 0, HIDDEN:HIDDEN + NUM_CLASSES]
    return {'logits': logits, 'pooler_repr': pooler}


# ----------------------------- demo -----------------------------
if __name__ == "__main__":
    key = jax.random.PRNGKey(0)
    pkey, ikey = jax.random.split(key)
    params = init_params(pkey)

    input_ids = jax.random.randint(ikey, (BATCH, SEQ), 0, VOCAB_SIZE, dtype=jnp.int32)
    attention_mask = jnp.array([[1, 1, 1, 1, 1, 1, 0, 0],
                                [1, 1, 1, 1, 0, 0, 0, 0]], dtype=jnp.int32)

    out = text_albert_forward(params, input_ids, attention_mask)
    jax.block_until_ready(out)

    assert out['logits'].shape == (BATCH, NUM_CLASSES)
    assert out['pooler_repr'].shape == (BATCH, HIDDEN)
    print("KERNEL_OK")
</pallas_src>

<mosaic_0001>
module attributes {stable_mosaic.version = 11 : i64} {
  func.func @text_albert_kernel(%arg0: i32, %arg1: memref<1x8x16xf32, #tpu.memory_space<vmem>>, %arg2: memref<1x1x8xf32, #tpu.memory_space<vmem>>, %arg3: memref<12x128xf32, #tpu.memory_space<vmem>>, %arg4: memref<16x32xbf16, #tpu.memory_space<vmem>>, %arg5: memref<32x96xbf16, #tpu.memory_space<vmem>>, %arg6: memref<32x32xbf16, #tpu.memory_space<vmem>>, %arg7: memref<32x64xbf16, #tpu.memory_space<vmem>>, %arg8: memref<64x32xbf16, #tpu.memory_space<vmem>>, %arg9: memref<32x4xbf16, #tpu.memory_space<vmem>>, %arg10: memref<1x1x128xf32, #tpu.memory_space<vmem>>) attributes {dimension_semantics = [#tpu.dimension_semantics<parallel>], iteration_bounds = array<i64: 2>, scalar_prefetch = 0 : i64, scratch_operands = 0 : i64, tpu.core_type = #tpu.core_type<tc>, window_params = [{transform_indices = @transform_0, window_bounds = array<i64: 1, 8, 16>}, {transform_indices = @transform_1, window_bounds = array<i64: 1, 1, 8>}, {pipeline_mode = #tpu.pipeline_mode<synchronous>, transform_indices = @transform_2, window_bounds = array<i64: 12, 128>}, {pipeline_mode = #tpu.pipeline_mode<synchronous>, transform_indices = @transform_3, window_bounds = array<i64: 16, 32>}, {pipeline_mode = #tpu.pipeline_mode<synchronous>, transform_indices = @transform_4, window_bounds = array<i64: 32, 96>}, {pipeline_mode = #tpu.pipeline_mode<synchronous>, transform_indices = @transform_5, window_bounds = array<i64: 32, 32>}, {pipeline_mode = #tpu.pipeline_mode<synchronous>, transform_indices = @transform_6, window_bounds = array<i64: 32, 64>}, {pipeline_mode = #tpu.pipeline_mode<synchronous>, transform_indices = @transform_7, window_bounds = array<i64: 64, 32>}, {pipeline_mode = #tpu.pipeline_mode<synchronous>, transform_indices = @transform_8, window_bounds = array<i64: 32, 4>}, {transform_indices = @transform_9, window_bounds = array<i64: 1, 1, 128>}]} {
    %c0 = arith.constant 0 : index
    %c0_0 = arith.constant 0 : index
    %0 = vector.load %arg3[%c0, %c0_0] : memref<12x128xf32, #tpu.memory_space<vmem>>, vector<12x128xf32>
    %1 = vector.extract_strided_slice %0 {offsets = [0, 0], sizes = [1, 16], strides = [1, 1]} : vector<12x128xf32> to vector<1x16xf32>
    %2 = vector.extract_strided_slice %0 {offsets = [1, 0], sizes = [1, 16], strides = [1, 1]} : vector<12x128xf32> to vector<1x16xf32>
    %3 = vector.extract_strided_slice %0 {offsets = [2, 0], sizes = [1, 32], strides = [1, 1]} : vector<12x128xf32> to vector<1x32xf32>
    %4 = vector.extract_strided_slice %0 {offsets = [3, 0], sizes = [1, 96], strides = [1, 1]} : vector<12x128xf32> to vector<1x96xf32>
    %5 = vector.extract_strided_slice %0 {offsets = [4, 0], sizes = [1, 32], strides = [1, 1]} : vector<12x128xf32> to vector<1x32xf32>
    %6 = vector.extract_strided_slice %0 {offsets = [5, 0], sizes = [1, 32], strides = [1, 1]} : vector<12x128xf32> to vector<1x32xf32>
    %7 = vector.extract_strided_slice %0 {offsets = [6, 0], sizes = [1, 32], strides = [1, 1]} : vector<12x128xf32> to vector<1x32xf32>
    %8 = vector.extract_strided_slice %0 {offsets = [7, 0], sizes = [1, 64], strides = [1, 1]} : vector<12x128xf32> to vector<1x64xf32>
    %9 = vector.extract_strided_slice %0 {offsets = [8, 0], sizes = [1, 32], strides = [1, 1]} : vector<12x128xf32> to vector<1x32xf32>
    %10 = vector.extract_strided_slice %0 {offsets = [9, 0], sizes = [1, 32], strides = [1, 1]} : vector<12x128xf32> to vector<1x32xf32>
    %11 = vector.extract_strided_slice %0 {offsets = [10, 0], sizes = [1, 32], strides = [1, 1]} : vector<12x128xf32> to vector<1x32xf32>
    %12 = vector.extract_strided_slice %0 {offsets = [11, 0], sizes = [1, 4], strides = [1, 1]} : vector<12x128xf32> to vector<1x4xf32>
    %c0_1 = arith.constant 0 : index
    %c0_2 = arith.constant 0 : index
    %c0_3 = arith.constant 0 : index
    %13 = vector.load %arg2[%c0_1, %c0_2, %c0_3] : memref<1x1x8xf32, #tpu.memory_space<vmem>>, vector<1x1x8xf32>
    %14 = vector.shape_cast %13 : vector<1x1x8xf32> to vector<1x8xf32>
    %c0_4 = arith.constant 0 : index
    %c0_5 = arith.constant 0 : index
    %c0_6 = arith.constant 0 : index
    %15 = vector.load %arg1[%c0_4, %c0_5, %c0_6] : memref<1x8x16xf32, #tpu.memory_space<vmem>>, vector<1x8x16xf32>
    %16 = vector.shape_cast %15 : vector<1x8x16xf32> to vector<8x16xf32>
    %cst = arith.constant dense<0.000000e+00> : vector<8xf32>
    %17 = vector.multi_reduction <add>, %16, %cst [1] : vector<8x16xf32> to vector<8xf32>
    %18 = vector.shape_cast %17 : vector<8xf32> to vector<8x1xf32>
    %cst_7 = arith.constant 1.600000e+01 : f32
    %19 = vector.broadcast %cst_7 : f32 to vector<8x1xf32>
    %20 = arith.divf %18, %19 : vector<8x1xf32>
    %21 = vector.broadcast %20 : vector<8x1xf32> to vector<8x16xf32>
    %22 = arith.subf %16, %21 : vector<8x16xf32>
    %23 = arith.mulf %22, %22 : vector<8x16xf32>
    %cst_8 = arith.constant dense<0.000000e+00> : vector<8xf32>
    %24 = vector.multi_reduction <add>, %23, %cst_8 [1] : vector<8x16xf32> to vector<8xf32>
    %25 = vector.shape_cast %24 : vector<8xf32> to vector<8x1xf32>
    %cst_9 = arith.constant 1.600000e+01 : f32
    %26 = vector.broadcast %cst_9 : f32 to vector<8x1xf32>
    %27 = arith.divf %25, %26 : vector<8x1xf32>
    %28 = vector.broadcast %20 : vector<8x1xf32> to vector<8x16xf32>
    %29 = arith.subf %16, %28 : vector<8x16xf32>
    %cst_10 = arith.constant 9.99999996E-13 : f32
    %30 = vector.broadcast %cst_10 : f32 to vector<8x1xf32>
    %31 = arith.addf %27, %30 : vector<8x1xf32>
    %32 = math.rsqrt %31 : vector<8x1xf32>
    %33 = vector.broadcast %32 : vector<8x1xf32> to vector<8x16xf32>
    %34 = arith.mulf %29, %33 : vector<8x16xf32>
    %35 = vector.broadcast %1 : vector<1x16xf32> to vector<8x16xf32>
    %36 = arith.mulf %34, %35 : vector<8x16xf32>
    %37 = vector.broadcast %2 : vector<1x16xf32> to vector<8x16xf32>
    %38 = arith.addf %36, %37 : vector<8x16xf32>
    %39 = arith.truncf %38 : vector<8x16xf32> to vector<8x16xbf16>
    %c0_11 = arith.constant 0 : index
    %c0_12 = arith.constant 0 : index
    %40 = vector.load %arg4[%c0_11, %c0_12] : memref<16x32xbf16, #tpu.memory_space<vmem>>, vector<16x32xbf16>
    %cst_13 = arith.constant dense<0.000000e+00> : vector<8x32xf32>
    %41 = tpu.matmul %39, %40, %cst_13 {dimension_numbers = #tpu.dot_dimension_numbers<[1], [0], [0], [1], [0, 0, 1, 1], [], []>} : vector<8x16xbf16>, vector<16x32xbf16>, vector<8x32xf32> -> vector<8x32xf32>
    %42 = vector.broadcast %3 : vector<1x32xf32> to vector<8x32xf32>
    %43 = arith.addf %41, %42 : vector<8x32xf32>
    %c0_14 = arith.constant 0 : index
    %c0_15 = arith.constant 0 : index
    %44 = vector.load %arg5[%c0_14, %c0_15] : memref<32x96xbf16, #tpu.memory_space<vmem>>, vector<32x96xbf16>
    %c0_16 = arith.constant 0 : index
    %c0_17 = arith.constant 0 : index
    %45 = vector.load %arg6[%c0_16, %c0_17] : memref<32x32xbf16, #tpu.memory_space<vmem>>, vector<32x32xbf16>
    %c0_18 = arith.constant 0 : index
    %c0_19 = arith.constant 0 : index
    %46 = vector.load %arg7[%c0_18, %c0_19] : memref<32x64xbf16, #tpu.memory_space<vmem>>, vector<32x64xbf16>
    %c0_20 = arith.constant 0 : index
    %c0_21 = arith.constant 0 : index
    %47 = vector.load %arg8[%c0_20, %c0_21] : memref<64x32xbf16, #tpu.memory_space<vmem>>, vector<64x32xbf16>
    %48 = arith.truncf %43 : vector<8x32xf32> to vector<8x32xbf16>
    %cst_22 = arith.constant dense<0.000000e+00> : vector<8x96xf32>
    %49 = tpu.matmul %48, %44, %cst_22 {dimension_numbers = #tpu.dot_dimension_numbers<[1], [0], [0], [1], [0, 0, 1, 1], [], []>} : vector<8x32xbf16>, vector<32x96xbf16>, vector<8x96xf32> -> vector<8x96xf32>
    %50 = vector.broadcast %4 : vector<1x96xf32> to vector<8x96xf32>
    %51 = arith.addf %49, %50 : vector<8x96xf32>
    %52 = arith.truncf %51 : vector<8x96xf32> to vector<8x96xbf16>
    %53 = vector.extract_strided_slice %52 {offsets = [0, 0], sizes = [8, 16], strides = [1, 1]} : vector<8x96xbf16> to vector<8x16xbf16>
    %54 = vector.extract_strided_slice %52 {offsets = [0, 32], sizes = [8, 16], strides = [1, 1]} : vector<8x96xbf16> to vector<8x16xbf16>
    %55 = vector.extract_strided_slice %52 {offsets = [0, 64], sizes = [8, 16], strides = [1, 1]} : vector<8x96xbf16> to vector<8x16xbf16>
    "tpu.trace_start"() <{level = 10 : i32, message = "qd,kd->qk"}> : () -> ()
    %cst_23 = arith.constant dense<0.000000e+00> : vector<8x8xf32>
    %56 = tpu.matmul %53, %54, %cst_23 {dimension_numbers = #tpu.dot_dimension_numbers<[1], [1], [0], [0], [0, 0, 1, 0], [], []>} : vector<8x16xbf16>, vector<8x16xbf16>, vector<8x8xf32> -> vector<8x8xf32>
    "tpu.trace_stop"() : () -> ()
    %cst_24 = arith.constant 2.500000e-01 : f32
    %57 = vector.broadcast %cst_24 : f32 to vector<8x8xf32>
    %58 = arith.mulf %56, %57 : vector<8x8xf32>
    %59 = vector.broadcast %14 : vector<1x8xf32> to vector<8x8xf32>
    %60 = arith.addf %58, %59 : vector<8x8xf32>
    %cst_25 = arith.constant dense<0xFF800000> : vector<8xf32>
    %61 = vector.multi_reduction <maximumf>, %60, %cst_25 [1] : vector<8x8xf32> to vector<8xf32>
    %62 = vector.shape_cast %61 : vector<8xf32> to vector<8x1xf32>
    %63 = vector.broadcast %62 : vector<8x1xf32> to vector<8x8xf32>
    %64 = arith.subf %60, %63 : vector<8x8xf32>
    %65 = math.exp %64 : vector<8x8xf32>
    %cst_26 = arith.constant dense<0.000000e+00> : vector<8xf32>
    %66 = vector.multi_reduction <add>, %65, %cst_26 [1] : vector<8x8xf32> to vector<8xf32>
    %67 = vector.shape_cast %66 : vector<8xf32> to vector<8x1xf32>
    %68 = tpu.reciprocal %67 {approx = true} : vector<8x1xf32> -> vector<8x1xf32>
    %69 = vector.broadcast %68 : vector<8x1xf32> to vector<8x8xf32>
    %70 = arith.mulf %65, %69 : vector<8x8xf32>
    %71 = arith.truncf %70 : vector<8x8xf32> to vector<8x8xbf16>
    %cst_27 = arith.constant dense<0.000000e+00> : vector<8x16xf32>
    %72 = tpu.matmul %71, %55, %cst_27 {dimension_numbers = #tpu.dot_dimension_numbers<[1], [0], [0], [1], [0, 0, 1, 1], [], []>} : vector<8x8xbf16>, vector<8x16xbf16>, vector<8x16xf32> -> vector<8x16xf32>
    %73 = vector.extract_strided_slice %52 {offsets = [0, 16], sizes = [8, 16], strides = [1, 1]} : vector<8x96xbf16> to vector<8x16xbf16>
    %74 = vector.extract_strided_slice %52 {offsets = [0, 48], sizes = [8, 16], strides = [1, 1]} : vector<8x96xbf16> to vector<8x16xbf16>
    %75 = vector.extract_strided_slice %52 {offsets = [0, 80], sizes = [8, 16], strides = [1, 1]} : vector<8x96xbf16> to vector<8x16xbf16>
    "tpu.trace_start"() <{level = 10 : i32, message = "qd,kd->qk"}> : () -> ()
    %cst_28 = arith.constant dense<0.000000e+00> : vector<8x8xf32>
    %76 = tpu.matmul %73, %74, %cst_28 {dimension_numbers = #tpu.dot_dimension_numbers<[1], [1], [0], [0], [0, 0, 1, 0], [], []>} : vector<8x16xbf16>, vector<8x16xbf16>, vector<8x8xf32> -> vector<8x8xf32>
    "tpu.trace_stop"() : () -> ()
    %cst_29 = arith.constant 2.500000e-01 : f32
    %77 = vector.broadcast %cst_29 : f32 to vector<8x8xf32>
    %78 = arith.mulf %76, %77 : vector<8x8xf32>
    %79 = vector.broadcast %14 : vector<1x8xf32> to vector<8x8xf32>
    %80 = arith.addf %78, %79 : vector<8x8xf32>
    %cst_30 = arith.constant dense<0xFF800000> : vector<8xf32>
    %81 = vector.multi_reduction <maximumf>, %80, %cst_30 [1] : vector<8x8xf32> to vector<8xf32>
    %82 = vector.shape_cast %81 : vector<8xf32> to vector<8x1xf32>
    %83 = vector.broadcast %82 : vector<8x1xf32> to vector<8x8xf32>
    %84 = arith.subf %80, %83 : vector<8x8xf32>
    %85 = math.exp %84 : vector<8x8xf32>
    %cst_31 = arith.constant dense<0.000000e+00> : vector<8xf32>
    %86 = vector.multi_reduction <add>, %85, %cst_31 [1] : vector<8x8xf32> to vector<8xf32>
    %87 = vector.shape_cast %86 : vector<8xf32> to vector<8x1xf32>
    %88 = tpu.reciprocal %87 {approx = true} : vector<8x1xf32> -> vector<8x1xf32>
    %89 = vector.broadcast %88 : vector<8x1xf32> to vector<8x8xf32>
    %90 = arith.mulf %85, %89 : vector<8x8xf32>
    %91 = arith.truncf %90 : vector<8x8xf32> to vector<8x8xbf16>
    %cst_32 = arith.constant dense<0.000000e+00> : vector<8x16xf32>
    %92 = tpu.matmul %91, %75, %cst_32 {dimension_numbers = #tpu.dot_dimension_numbers<[1], [0], [0], [1], [0, 0, 1, 1], [], []>} : vector<8x8xbf16>, vector<8x16xbf16>, vector<8x16xf32> -> vector<8x16xf32>
    %93 = tpu.concatenate %72, %92 in 1 : vector<8x16xf32>, vector<8x16xf32> -> vector<8x32xf32>
    %94 = arith.truncf %93 : vector<8x32xf32> to vector<8x32xbf16>
    %cst_33 = arith.constant dense<0.000000e+00> : vector<8x32xf32>
    %95 = tpu.matmul %94, %45, %cst_33 {dimension_numbers = #tpu.dot_dimension_numbers<[1], [0], [0], [1], [0, 0, 1, 1], [], []>} : vector<8x32xbf16>, vector<32x32xbf16>, vector<8x32xf32> -> vector<8x32xf32>
    %96 = vector.broadcast %5 : vector<1x32xf32> to vector<8x32xf32>
    %97 = arith.addf %95, %96 : vector<8x32xf32>
    %98 = arith.addf %43, %97 : vector<8x32xf32>
    %cst_34 = arith.constant dense<0.000000e+00> : vector<8xf32>
    %99 = vector.multi_reduction <add>, %98, %cst_34 [1] : vector<8x32xf32> to vector<8xf32>
    %100 = vector.shape_cast %99 : vector<8xf32> to vector<8x1xf32>
    %cst_35 = arith.constant 3.200000e+01 : f32
    %101 = vector.broadcast %cst_35 : f32 to vector<8x1xf32>
    %102 = arith.divf %100, %101 : vector<8x1xf32>
    %103 = vector.broadcast %102 : vector<8x1xf32> to vector<8x32xf32>
    %104 = arith.subf %98, %103 : vector<8x32xf32>
    %105 = arith.mulf %104, %104 : vector<8x32xf32>
    %cst_36 = arith.constant dense<0.000000e+00> : vector<8xf32>
    %106 = vector.multi_reduction <add>, %105, %cst_36 [1] : vector<8x32xf32> to vector<8xf32>
    %107 = vector.shape_cast %106 : vector<8xf32> to vector<8x1xf32>
    %cst_37 = arith.constant 3.200000e+01 : f32
    %108 = vector.broadcast %cst_37 : f32 to vector<8x1xf32>
    %109 = arith.divf %107, %108 : vector<8x1xf32>
    %110 = vector.broadcast %102 : vector<8x1xf32> to vector<8x32xf32>
    %111 = arith.subf %98, %110 : vector<8x32xf32>
    %cst_38 = arith.constant 9.99999996E-13 : f32
    %112 = vector.broadcast %cst_38 : f32 to vector<8x1xf32>
    %113 = arith.addf %109, %112 : vector<8x1xf32>
    %114 = math.rsqrt %113 : vector<8x1xf32>
    %115 = vector.broadcast %114 : vector<8x1xf32> to vector<8x32xf32>
    %116 = arith.mulf %111, %115 : vector<8x32xf32>
    %117 = vector.broadcast %6 : vector<1x32xf32> to vector<8x32xf32>
    %118 = arith.mulf %116, %117 : vector<8x32xf32>
    %119 = vector.broadcast %7 : vector<1x32xf32> to vector<8x32xf32>
    %120 = arith.addf %118, %119 : vector<8x32xf32>
    %121 = arith.truncf %120 : vector<8x32xf32> to vector<8x32xbf16>
    %cst_39 = arith.constant dense<0.000000e+00> : vector<8x64xf32>
    %122 = tpu.matmul %121, %46, %cst_39 {dimension_numbers = #tpu.dot_dimension_numbers<[1], [0], [0], [1], [0, 0, 1, 1], [], []>} : vector<8x32xbf16>, vector<32x64xbf16>, vector<8x64xf32> -> vector<8x64xf32>
    %123 = vector.broadcast %8 : vector<1x64xf32> to vector<8x64xf32>
    %124 = arith.addf %122, %123 : vector<8x64xf32>
    %cst_40 = arith.constant 5.000000e-01 : f32
    %125 = vector.broadcast %cst_40 : f32 to vector<8x64xf32>
    %126 = arith.mulf %125, %124 : vector<8x64xf32>
    %cst_41 = arith.constant 4.471500e-02 : f32
    %127 = vector.broadcast %cst_41 : f32 to vector<8x64xf32>
    %128 = arith.mulf %127, %124 : vector<8x64xf32>
    %129 = arith.mulf %128, %124 : vector<8x64xf32>
    %130 = arith.mulf %129, %124 : vector<8x64xf32>
    %131 = arith.addf %124, %130 : vector<8x64xf32>
    %cst_42 = arith.constant 0.797884583 : f32
    %132 = vector.broadcast %cst_42 : f32 to vector<8x64xf32>
    %133 = arith.mulf %132, %131 : vector<8x64xf32>
    %134 = math.tanh %133 : vector<8x64xf32>
    %cst_43 = arith.constant 1.000000e+00 : f32
    %135 = vector.broadcast %cst_43 : f32 to vector<8x64xf32>
    %136 = arith.addf %135, %134 : vector<8x64xf32>
    %137 = arith.mulf %126, %136 : vector<8x64xf32>
    %138 = arith.truncf %137 : vector<8x64xf32> to vector<8x64xbf16>
    %cst_44 = arith.constant dense<0.000000e+00> : vector<8x32xf32>
    %139 = tpu.matmul %138, %47, %cst_44 {dimension_numbers = #tpu.dot_dimension_numbers<[1], [0], [0], [1], [0, 0, 1, 1], [], []>} : vector<8x64xbf16>, vector<64x32xbf16>, vector<8x32xf32> -> vector<8x32xf32>
    %140 = vector.broadcast %9 : vector<1x32xf32> to vector<8x32xf32>
    %141 = arith.addf %139, %140 : vector<8x32xf32>
    %142 = arith.addf %120, %141 : vector<8x32xf32>
    %cst_45 = arith.constant dense<0.000000e+00> : vector<8xf32>
    %143 = vector.multi_reduction <add>, %142, %cst_45 [1] : vector<8x32xf32> to vector<8xf32>
    %144 = vector.shape_cast %143 : vector<8xf32> to vector<8x1xf32>
    %cst_46 = arith.constant 3.200000e+01 : f32
    %145 = vector.broadcast %cst_46 : f32 to vector<8x1xf32>
    %146 = arith.divf %144, %145 : vector<8x1xf32>
    %147 = vector.broadcast %146 : vector<8x1xf32> to vector<8x32xf32>
    %148 = arith.subf %142, %147 : vector<8x32xf32>
    %149 = arith.mulf %148, %148 : vector<8x32xf32>
    %cst_47 = arith.constant dense<0.000000e+00> : vector<8xf32>
    %150 = vector.multi_reduction <add>, %149, %cst_47 [1] : vector<8x32xf32> to vector<8xf32>
    %151 = vector.shape_cast %150 : vector<8xf32> to vector<8x1xf32>
    %cst_48 = arith.constant 3.200000e+01 : f32
    %152 = vector.broadcast %cst_48 : f32 to vector<8x1xf32>
    %153 = arith.divf %151, %152 : vector<8x1xf32>
    %154 = vector.broadcast %146 : vector<8x1xf32> to vector<8x32xf32>
    %155 = arith.subf %142, %154 : vector<8x32xf32>
    %cst_49 = arith.constant 9.99999996E-13 : f32
    %156 = vector.broadcast %cst_49 : f32 to vector<8x1xf32>
    %157 = arith.addf %153, %156 : vector<8x1xf32>
    %158 = math.rsqrt %157 : vector<8x1xf32>
    %159 = vector.broadcast %158 : vector<8x1xf32> to vector<8x32xf32>
    %160 = arith.mulf %155, %159 : vector<8x32xf32>
    %161 = vector.broadcast %10 : vector<1x32xf32> to vector<8x32xf32>
    %162 = arith.mulf %160, %161 : vector<8x32xf32>
    %163 = vector.broadcast %11 : vector<1x32xf32> to vector<8x32xf32>
    %164 = arith.addf %162, %163 : vector<8x32xf32>
    %165 = arith.truncf %164 : vector<8x32xf32> to vector<8x32xbf16>
    %cst_50 = arith.constant dense<0.000000e+00> : vector<8x96xf32>
    %166 = tpu.matmul %165, %44, %cst_50 {dimension_numbers = #tpu.dot_dimension_numbers<[1], [0], [0], [1], [0, 0, 1, 1], [], []>} : vector<8x32xbf16>, vector<32x96xbf16>, vector<8x96xf32> -> vector<8x96xf32>
    %167 = vector.broadcast %4 : vector<1x96xf32> to vector<8x96xf32>
    %168 = arith.addf %166, %167 : vector<8x96xf32>
    %169 = arith.truncf %168 : vector<8x96xf32> to vector<8x96xbf16>
    %170 = vector.extract_strided_slice %169 {offsets = [0, 0], sizes = [8, 16], strides = [1, 1]} : vector<8x96xbf16> to vector<8x16xbf16>
    %171 = vector.extract_strided_slice %169 {offsets = [0, 32], sizes = [8, 16], strides = [1, 1]} : vector<8x96xbf16> to vector<8x16xbf16>
    %172 = vector.extract_strided_slice %169 {offsets = [0, 64], sizes = [8, 16], strides = [1, 1]} : vector<8x96xbf16> to vector<8x16xbf16>
    "tpu.trace_start"() <{level = 10 : i32, message = "qd,kd->qk"}> : () -> ()
    %cst_51 = arith.constant dense<0.000000e+00> : vector<8x8xf32>
    %173 = tpu.matmul %170, %171, %cst_51 {dimension_numbers = #tpu.dot_dimension_numbers<[1], [1], [0], [0], [0, 0, 1, 0], [], []>} : vector<8x16xbf16>, vector<8x16xbf16>, vector<8x8xf32> -> vector<8x8xf32>
    "tpu.trace_stop"() : () -> ()
    %cst_52 = arith.constant 2.500000e-01 : f32
    %174 = vector.broadcast %cst_52 : f32 to vector<8x8xf32>
    %175 = arith.mulf %173, %174 : vector<8x8xf32>
    %176 = vector.broadcast %14 : vector<1x8xf32> to vector<8x8xf32>
    %177 = arith.addf %175, %176 : vector<8x8xf32>
    %cst_53 = arith.constant dense<0xFF800000> : vector<8xf32>
    %178 = vector.multi_reduction <maximumf>, %177, %cst_53 [1] : vector<8x8xf32> to vector<8xf32>
    %179 = vector.shape_cast %178 : vector<8xf32> to vector<8x1xf32>
    %180 = vector.broadcast %179 : vector<8x1xf32> to vector<8x8xf32>
    %181 = arith.subf %177, %180 : vector<8x8xf32>
    %182 = math.exp %181 : vector<8x8xf32>
    %cst_54 = arith.constant dense<0.000000e+00> : vector<8xf32>
    %183 = vector.multi_reduction <add>, %182, %cst_54 [1] : vector<8x8xf32> to vector<8xf32>
    %184 = vector.shape_cast %183 : vector<8xf32> to vector<8x1xf32>
    %185 = tpu.reciprocal %184 {approx = true} : vector<8x1xf32> -> vector<8x1xf32>
    %186 = vector.broadcast %185 : vector<8x1xf32> to vector<8x8xf32>
    %187 = arith.mulf %182, %186 : vector<8x8xf32>
    %188 = arith.truncf %187 : vector<8x8xf32> to vector<8x8xbf16>
    %cst_55 = arith.constant dense<0.000000e+00> : vector<8x16xf32>
    %189 = tpu.matmul %188, %172, %cst_55 {dimension_numbers = #tpu.dot_dimension_numbers<[1], [0], [0], [1], [0, 0, 1, 1], [], []>} : vector<8x8xbf16>, vector<8x16xbf16>, vector<8x16xf32> -> vector<8x16xf32>
    %190 = vector.extract_strided_slice %169 {offsets = [0, 16], sizes = [8, 16], strides = [1, 1]} : vector<8x96xbf16> to vector<8x16xbf16>
    %191 = vector.extract_strided_slice %169 {offsets = [0, 48], sizes = [8, 16], strides = [1, 1]} : vector<8x96xbf16> to vector<8x16xbf16>
    %192 = vector.extract_strided_slice %169 {offsets = [0, 80], sizes = [8, 16], strides = [1, 1]} : vector<8x96xbf16> to vector<8x16xbf16>
    "tpu.trace_start"() <{level = 10 : i32, message = "qd,kd->qk"}> : () -> ()
    %cst_56 = arith.constant dense<0.000000e+00> : vector<8x8xf32>
    %193 = tpu.matmul %190, %191, %cst_56 {dimension_numbers = #tpu.dot_dimension_numbers<[1], [1], [0], [0], [0, 0, 1, 0], [], []>} : vector<8x16xbf16>, vector<8x16xbf16>, vector<8x8xf32> -> vector<8x8xf32>
    "tpu.trace_stop"() : () -> ()
    %cst_57 = arith.constant 2.500000e-01 : f32
    %194 = vector.broadcast %cst_57 : f32 to vector<8x8xf32>
    %195 = arith.mulf %193, %194 : vector<8x8xf32>
    %196 = vector.broadcast %14 : vector<1x8xf32> to vector<8x8xf32>
    %197 = arith.addf %195, %196 : vector<8x8xf32>
    %cst_58 = arith.constant dense<0xFF800000> : vector<8xf32>
    %198 = vector.multi_reduction <maximumf>, %197, %cst_58 [1] : vector<8x8xf32> to vector<8xf32>
    %199 = vector.shape_cast %198 : vector<8xf32> to vector<8x1xf32>
    %200 = vector.broadcast %199 : vector<8x1xf32> to vector<8x8xf32>
    %201 = arith.subf %197, %200 : vector<8x8xf32>
    %202 = math.exp %201 : vector<8x8xf32>
    %cst_59 = arith.constant dense<0.000000e+00> : vector<8xf32>
    %203 = vector.multi_reduction <add>, %202, %cst_59 [1] : vector<8x8xf32> to vector<8xf32>
    %204 = vector.shape_cast %203 : vector<8xf32> to vector<8x1xf32>
    %205 = tpu.reciprocal %204 {approx = true} : vector<8x1xf32> -> vector<8x1xf32>
    %206 = vector.broadcast %205 : vector<8x1xf32> to vector<8x8xf32>
    %207 = arith.mulf %202, %206 : vector<8x8xf32>
    %208 = arith.truncf %207 : vector<8x8xf32> to vector<8x8xbf16>
    %cst_60 = arith.constant dense<0.000000e+00> : vector<8x16xf32>
    %209 = tpu.matmul %208, %192, %cst_60 {dimension_numbers = #tpu.dot_dimension_numbers<[1], [0], [0], [1], [0, 0, 1, 1], [], []>} : vector<8x8xbf16>, vector<8x16xbf16>, vector<8x16xf32> -> vector<8x16xf32>
    %210 = tpu.concatenate %189, %209 in 1 : vector<8x16xf32>, vector<8x16xf32> -> vector<8x32xf32>
    %211 = arith.truncf %210 : vector<8x32xf32> to vector<8x32xbf16>
    %cst_61 = arith.constant dense<0.000000e+00> : vector<8x32xf32>
    %212 = tpu.matmul %211, %45, %cst_61 {dimension_numbers = #tpu.dot_dimension_numbers<[1], [0], [0], [1], [0, 0, 1, 1], [], []>} : vector<8x32xbf16>, vector<32x32xbf16>, vector<8x32xf32> -> vector<8x32xf32>
    %213 = vector.broadcast %5 : vector<1x32xf32> to vector<8x32xf32>
    %214 = arith.addf %212, %213 : vector<8x32xf32>
    %215 = arith.addf %164, %214 : vector<8x32xf32>
    %cst_62 = arith.constant dense<0.000000e+00> : vector<8xf32>
    %216 = vector.multi_reduction <add>, %215, %cst_62 [1] : vector<8x32xf32> to vector<8xf32>
    %217 = vector.shape_cast %216 : vector<8xf32> to vector<8x1xf32>
    %cst_63 = arith.constant 3.200000e+01 : f32
    %218 = vector.broadcast %cst_63 : f32 to vector<8x1xf32>
    %219 = arith.divf %217, %218 : vector<8x1xf32>
    %220 = vector.broadcast %219 : vector<8x1xf32> to vector<8x32xf32>
    %221 = arith.subf %215, %220 : vector<8x32xf32>
    %222 = arith.mulf %221, %221 : vector<8x32xf32>
    %cst_64 = arith.constant dense<0.000000e+00> : vector<8xf32>
    %223 = vector.multi_reduction <add>, %222, %cst_64 [1] : vector<8x32xf32> to vector<8xf32>
    %224 = vector.shape_cast %223 : vector<8xf32> to vector<8x1xf32>
    %cst_65 = arith.constant 3.200000e+01 : f32
    %225 = vector.broadcast %cst_65 : f32 to vector<8x1xf32>
    %226 = arith.divf %224, %225 : vector<8x1xf32>
    %227 = vector.broadcast %219 : vector<8x1xf32> to vector<8x32xf32>
    %228 = arith.subf %215, %227 : vector<8x32xf32>
    %cst_66 = arith.constant 9.99999996E-13 : f32
    %229 = vector.broadcast %cst_66 : f32 to vector<8x1xf32>
    %230 = arith.addf %226, %229 : vector<8x1xf32>
    %231 = math.rsqrt %230 : vector<8x1xf32>
    %232 = vector.broadcast %231 : vector<8x1xf32> to vector<8x32xf32>
    %233 = arith.mulf %228, %232 : vector<8x32xf32>
    %234 = vector.broadcast %6 : vector<1x32xf32> to vector<8x32xf32>
    %235 = arith.mulf %233, %234 : vector<8x32xf32>
    %236 = vector.broadcast %7 : vector<1x32xf32> to vector<8x32xf32>
    %237 = arith.addf %235, %236 : vector<8x32xf32>
    %238 = arith.truncf %237 : vector<8x32xf32> to vector<8x32xbf16>
    %cst_67 = arith.constant dense<0.000000e+00> : vector<8x64xf32>
    %239 = tpu.matmul %238, %46, %cst_67 {dimension_numbers = #tpu.dot_dimension_numbers<[1], [0], [0], [1], [0, 0, 1, 1], [], []>} : vector<8x32xbf16>, vector<32x64xbf16>, vector<8x64xf32> -> vector<8x64xf32>
    %240 = vector.broadcast %8 : vector<1x64xf32> to vector<8x64xf32>
    %241 = arith.addf %239, %240 : vector<8x64xf32>
    %cst_68 = arith.constant 5.000000e-01 : f32
    %242 = vector.broadcast %cst_68 : f32 to vector<8x64xf32>
    %243 = arith.mulf %242, %241 : vector<8x64xf32>
    %cst_69 = arith.constant 4.471500e-02 : f32
    %244 = vector.broadcast %cst_69 : f32 to vector<8x64xf32>
    %245 = arith.mulf %244, %241 : vector<8x64xf32>
    %246 = arith.mulf %245, %241 : vector<8x64xf32>
    %247 = arith.mulf %246, %241 : vector<8x64xf32>
    %248 = arith.addf %241, %247 : vector<8x64xf32>
    %cst_70 = arith.constant 0.797884583 : f32
    %249 = vector.broadcast %cst_70 : f32 to vector<8x64xf32>
    %250 = arith.mulf %249, %248 : vector<8x64xf32>
    %251 = math.tanh %250 : vector<8x64xf32>
    %cst_71 = arith.constant 1.000000e+00 : f32
    %252 = vector.broadcast %cst_71 : f32 to vector<8x64xf32>
    %253 = arith.addf %252, %251 : vector<8x64xf32>
    %254 = arith.mulf %243, %253 : vector<8x64xf32>
    %255 = arith.truncf %254 : vector<8x64xf32> to vector<8x64xbf16>
    %cst_72 = arith.constant dense<0.000000e+00> : vector<8x32xf32>
    %256 = tpu.matmul %255, %47, %cst_72 {dimension_numbers = #tpu.dot_dimension_numbers<[1], [0], [0], [1], [0, 0, 1, 1], [], []>} : vector<8x64xbf16>, vector<64x32xbf16>, vector<8x32xf32> -> vector<8x32xf32>
    %257 = vector.broadcast %9 : vector<1x32xf32> to vector<8x32xf32>
    %258 = arith.addf %256, %257 : vector<8x32xf32>
    %259 = arith.addf %237, %258 : vector<8x32xf32>
    %cst_73 = arith.constant dense<0.000000e+00> : vector<8xf32>
    %260 = vector.multi_reduction <add>, %259, %cst_73 [1] : vector<8x32xf32> to vector<8xf32>
    %261 = vector.shape_cast %260 : vector<8xf32> to vector<8x1xf32>
    %cst_74 = arith.constant 3.200000e+01 : f32
    %262 = vector.broadcast %cst_74 : f32 to vector<8x1xf32>
    %263 = arith.divf %261, %262 : vector<8x1xf32>
    %264 = vector.broadcast %263 : vector<8x1xf32> to vector<8x32xf32>
    %265 = arith.subf %259, %264 : vector<8x32xf32>
    %266 = arith.mulf %265, %265 : vector<8x32xf32>
    %cst_75 = arith.constant dense<0.000000e+00> : vector<8xf32>
    %267 = vector.multi_reduction <add>, %266, %cst_75 [1] : vector<8x32xf32> to vector<8xf32>
    %268 = vector.shape_cast %267 : vector<8xf32> to vector<8x1xf32>
    %cst_76 = arith.constant 3.200000e+01 : f32
    %269 = vector.broadcast %cst_76 : f32 to vector<8x1xf32>
    %270 = arith.divf %268, %269 : vector<8x1xf32>
    %271 = vector.broadcast %263 : vector<8x1xf32> to vector<8x32xf32>
    %272 = arith.subf %259, %271 : vector<8x32xf32>
    %cst_77 = arith.constant 9.99999996E-13 : f32
    %273 = vector.broadcast %cst_77 : f32 to vector<8x1xf32>
    %274 = arith.addf %270, %273 : vector<8x1xf32>
    %275 = math.rsqrt %274 : vector<8x1xf32>
    %276 = vector.broadcast %275 : vector<8x1xf32> to vector<8x32xf32>
    %277 = arith.mulf %272, %276 : vector<8x32xf32>
    %278 = vector.broadcast %10 : vector<1x32xf32> to vector<8x32xf32>
    %279 = arith.mulf %277, %278 : vector<8x32xf32>
    %280 = vector.broadcast %11 : vector<1x32xf32> to vector<8x32xf32>
    %281 = arith.addf %279, %280 : vector<8x32xf32>
    %282 = vector.extract_strided_slice %281 {offsets = [0, 0], sizes = [1, 32], strides = [1, 1]} : vector<8x32xf32> to vector<1x32xf32>
    %283 = arith.truncf %282 : vector<1x32xf32> to vector<1x32xbf16>
    %c0_78 = arith.constant 0 : index
    %c0_79 = arith.constant 0 : index
    %284 = vector.load %arg9[%c0_78, %c0_79] : memref<32x4xbf16, #tpu.memory_space<vmem>>, vector<32x4xbf16>
    %cst_80 = arith.constant dense<0.000000e+00> : vector<1x4xf32>
    %285 = tpu.matmul %283, %284, %cst_80 {dimension_numbers = #tpu.dot_dimension_numbers<[1], [0], [0], [1], [0, 0, 1, 1], [], []>} : vector<1x32xbf16>, vector<32x4xbf16>, vector<1x4xf32> -> vector<1x4xf32>
    %286 = arith.addf %285, %12 : vector<1x4xf32>
    %cst_81 = arith.constant 0.000000e+00 : f32
    %287 = vector.broadcast %cst_81 : f32 to vector<1x92xf32>
    %288 = tpu.concatenate %282, %286, %287 in 1 : vector<1x32xf32>, vector<1x4xf32>, vector<1x92xf32> -> vector<1x128xf32>
    %289 = vector.shape_cast %288 : vector<1x128xf32> to vector<1x1x128xf32>
    %c0_82 = arith.constant 0 : index
    %c0_83 = arith.constant 0 : index
    %c0_84 = arith.constant 0 : index
    %290 = vector.load %arg10[%c0_82, %c0_83, %c0_84] : memref<1x1x128xf32, #tpu.memory_space<vmem>>, vector<1x1x128xf32>
    tpu.vector_store %arg10[%c0_82, %c0_83, %c0_84], %289 {strides = array<i32>} : memref<1x1x128xf32, #tpu.memory_space<vmem>>, vector<1x1x128xf32>,
    return
  }
  func.func @transform_0(%arg0: i32) -> (i32, i32, i32) {
    %c0_i32 = arith.constant 0 : i32
    %c0_i32_0 = arith.constant 0 : i32
    %c0_i32_1 = arith.constant 0 : i32
    return %arg0, %c0_i32, %c0_i32_0 : i32, i32, i32
  }
  func.func @transform_1(%arg0: i32) -> (i32, i32, i32) {
    %c0_i32 = arith.constant 0 : i32
    %c0_i32_0 = arith.constant 0 : i32
    %c0_i32_1 = arith.constant 0 : i32
    return %arg0, %c0_i32, %c0_i32_0 : i32, i32, i32
  }
  func.func @transform_2(%arg0: i32) -> (i32, i32) {
    %c0_i32 = arith.constant 0 : i32
    %c0_i32_0 = arith.constant 0 : i32
    %c0_i32_1 = arith.constant 0 : i32
    return %c0_i32, %c0_i32_0 : i32, i32
  }
  func.func @transform_3(%arg0: i32) -> (i32, i32) {
    %c0_i32 = arith.constant 0 : i32
    %c0_i32_0 = arith.constant 0 : i32
    %c0_i32_1 = arith.constant 0 : i32
    return %c0_i32, %c0_i32_0 : i32, i32
  }
  func.func @transform_4(%arg0: i32) -> (i32, i32) {
    %c0_i32 = arith.constant 0 : i32
    %c0_i32_0 = arith.constant 0 : i32
    %c0_i32_1 = arith.constant 0 : i32
    return %c0_i32, %c0_i32_0 : i32, i32
  }
  func.func @transform_5(%arg0: i32) -> (i32, i32) {
    %c0_i32 = arith.constant 0 : i32
    %c0_i32_0 = arith.constant 0 : i32
    %c0_i32_1 = arith.constant 0 : i32
    return %c0_i32, %c0_i32_0 : i32, i32
  }
  func.func @transform_6(%arg0: i32) -> (i32, i32) {
    %c0_i32 = arith.constant 0 : i32
    %c0_i32_0 = arith.constant 0 : i32
    %c0_i32_1 = arith.constant 0 : i32
    return %c0_i32, %c0_i32_0 : i32, i32
  }
  func.func @transform_7(%arg0: i32) -> (i32, i32) {
    %c0_i32 = arith.constant 0 : i32
    %c0_i32_0 = arith.constant 0 : i32
    %c0_i32_1 = arith.constant 0 : i32
    return %c0_i32, %c0_i32_0 : i32, i32
  }
  func.func @transform_8(%arg0: i32) -> (i32, i32) {
    %c0_i32 = arith.constant 0 : i32
    %c0_i32_0 = arith.constant 0 : i32
    %c0_i32_1 = arith.constant 0 : i32
    return %c0_i32, %c0_i32_0 : i32, i32
  }
  func.func @transform_9(%arg0: i32) -> (i32, i32, i32) {
    %c0_i32 = arith.constant 0 : i32
    %c0_i32_0 = arith.constant 0 : i32
    %c0_i32_1 = arith.constant 0 : i32
    return %arg0, %c0_i32, %c0_i32_0 : i32, i32, i32
  }
}

</mosaic_0001>

<bundles_post_ra>
// kernel: text_albert_forward.1
= control target key start
LH: loop header
LB: loop body
LE: loop exit
PB: predicated region body
PF: predicated region fallthrough
CT: control target
= control target key end

     0   :  { %s1317_s30 = smov 0   ;;  %s1565_s0 = inlined_call_operand.vmem [shape: f32[2,8,16], index: 0, kind: input, shape index: {}]   ;;  %s1566_s1 = inlined_call_operand.vmem [shape: f32[2,1,8], index: 1, kind: input, shape index: {}]   ;;  %s1567_s2 = inlined_call_operand.vmem [shape: f32[12,128], index: 2, kind: input, shape index: {}]   ;;  %s1568_s3 = inlined_call_operand.vmem [shape: bf16[16,32], index: 3, kind: input, shape index: {}]   ;;  %s1569_s4 = inlined_call_operand.vmem [shape: bf16[32,96], index: 4, kind: input, shape index: {}]   ;;  %s1570_s5 = inlined_call_operand.vmem [shape: bf16[32,32], index: 5, kind: input, shape index: {}]   ;;  %s1571_s6 = inlined_call_operand.vmem [shape: bf16[32,64], index: 6, kind: input, shape index: {}]   ;;  %s1572_s7 = inlined_call_operand.vmem [shape: bf16[64,32], index: 7, kind: input, shape index: {}]   ;;  %s1573_s8 = inlined_call_operand.vmem [shape: bf16[32,4], index: 8, kind: input, shape index: {}]   ;;  %s1574_s9 = inlined_call_operand.vmem [shape: f32[2,1,128], index: 9, kind: output, shape index: {}]  }
   0x1 LB: > { %s1107_s10 = sadd.s32 4294967295, %s1256_s30   ;;  %p1111_p0 = scmp.ge.s32.totalorder %s1256_s30, 1  ;;  %s1256_s30 = sphi %s1317_s30, %s19_s30  }
   0x2   : > { %p294_p1 = scmp.lt.s32.totalorder %s1256_s30, 3 }
   0x4   : > { %p295_p2 = pnand %p1111_p0, %p294_p1 }
   0x5   : > { %p330_p3 = scmp.lt.s32.totalorder (!%p295_p2), %s1107_s10, 1  ;;  %s1259_s26 = smov (!%p295_p2), 112  }
   0x6   : > { %298 = sbr.rel (%p295_p2) target bundleno = 4395 (0x112b), region = 56  ;;  %s1260_s27 = smov (!%p295_p2), 96  }
   0x7   : > { %s1261_s28 = smov (!%p295_p2), 80   ;;  %s1262_s12 = smov (!%p295_p2), 64  }
   0x8   : > { %s1263_s13 = smov (!%p295_p2), 48   ;;  %s1264_s16 = smov (!%p295_p2), 16  }
   0xb   : > { %s1576_s10 = smov (!%p330_p3, %s1107_s10), 1  ;;  %vm345_vm0 = vcmask 130048   ;;  %v1258_v2 = vmov 16.0   ;;  %v1185_v14 = vld [vmem:[%s1568_s3] sm:$0xff]  ;;  %v1343_v15 = vld [vmem:[%s1569_s4 + $0x8] sm:$0xff]  ;;  %vm439_vm5 = vcmask 261120  }
   0xc   : > { %s1112_s11 = sshll.u32 %s1576_s10, 3  ;;  %s336_s14 = scalar_lea.vmem %s1566_s1, %s1576_s10  ;;  %1216 = vrcp.f32 %v1258_v2  ;;  %399 = vmatpush.bf16.msra.mxu0 %v1185_v14  ;;  %449 = vmatpush.bf16.msra.mxu1 %v1343_v15  ;;  %v1349_v24 = vld [vmem:[%s1567_s2] sm:$0xff]  ;;  %vm486_vm6 = vcmask 64512   ;;  %vm504_vm7 = vcmask 1043456   ;;  %vm713_vm12 = vcmask 523264  }
   0xd   : > { %s333_s17 = scalar_lea.vmem %s1565_s0, %s1112_s11  ;;  %v375_v26 = vperm.slane %v1349_v24, 0  ;;  %v377_v29 = vperm.slane %v1349_v24, 1  ;;  %v1357_v33 = vld [vmem:[%s1569_s4] sm:$0xff]  ;;  %v382_v34 = vperm.slane %v1349_v24, 2  ;;  %v426_v39 = vperm.slane %v1349_v24, 3  ;;  %s339_s21 = scalar_lea.vmem %s1574_s9, %s1576_s10 }
   0xe   : > { %v344_v0 = vld [vmem:[%s333_s17] sm:$0xff] }
   0xf   : > { %v346_v1 = vsel %vm345_vm0, %v344_v0, 0.0  ;;  %v1381_v51 = vld [vmem:[%s336_s14] ss:$0 sm:$0xff] }
  0x10   : > { %347 = vadd.xlane.f32.xlu0 %v346_v1  ;;  %450 = vmatpush.bf16.msra.mxu1 %v1357_v33 }
  0x12   : > { %v1217_v3 = vpop.eup %1216 }
  0x13   : > { %v350_v4 = vmul.f32 16.0, %v1217_v3  ;;  %vm354_vm1 = vweird.f32 %v1217_v3 }
  0x15   : > { %v351_v5 = vsub.f32 1.0, %v350_v4 }
  0x17   : > { %v352_v6 = vmul.f32 %v1217_v3, %v351_v5 }
  0x19   : > { %v353_v7 = vadd.f32 %v1217_v3, %v352_v6 }
  0x1b   : > { %v355_v8 = vsel %vm354_vm1, %v1217_v3, %v353_v7 }
  0x83   : > { %v348_v9 = vpop.xlane.xlu0 %347 }
  0x84   : > { %v356_v10 = vmul.f32 %v355_v8, %v348_v9 }
  0x86   : > { %v357_v11 = vsub.f32 %v344_v0, %v356_v10 }
  0x88   : > { %v358_v12 = vmul.f32 %v357_v11, %v357_v11 }
  0x8a   : > { %v359_v13 = vsel %vm345_vm0, %v358_v12, 0.0 }
  0x8b   : > { %360 = vadd.xlane.f32.xlu0 %v359_v13 }
  0xfe   : > { %v361_v16 = vpop.xlane.xlu0 %360 }
  0xff   : > { %v362_v17 = vmul.f32 %v361_v16, %v355_v8 }
 0x101   : > { %v363_v18 = vadd.f32 1e-12, %v362_v17 }
 0x103   : > { %1218 = vrsqrt.f32 %v363_v18  ;;  %vm370_vm3 = vweird.f32 %v363_v18 }
 0x109   : > { %v1219_v19 = vpop.eup %1218 }
 0x10a   : > { %v365_v20 = vmul.f32 %v1219_v19, %v363_v18  ;;  %vm371_vm2 = vweird.f32 %v1219_v19 }
 0x10b   : > { %vm372_vm4 = vmor %vm370_vm3, %vm371_vm2 }
 0x10c   : > { %v366_v21 = vmul.f32 %v1219_v19, %v365_v20 }
 0x10e   : > { %v367_v22 = vmul.f32 0.5, %v366_v21  ;;  %v1400_v21 = vld [vmem:[%s1570_s5 + $0x8] sm:$0xff] }
 0x10f   : > { %607 = vmatpush.bf16.msrb.mxu1 %v1400_v21 }
 0x110   : > { %v368_v23 = vsub.f32 1.5, %v367_v22 }
 0x112   : > { %v369_v25 = vmul.f32 %v1219_v19, %v368_v23 }
 0x114   : > { %v373_v27 = vsel %vm372_vm4, %v1219_v19, %v369_v25 }
 0x115   : > { %v374_v28 = vmul.f32 %v373_v27, %v357_v11 }
 0x117   : > { %v376_v30 = vmul.f32 %v375_v26, %v374_v28  ;;  %v1407_v26 = vld [vmem:[%s1570_s5] sm:$0xff] }
 0x118   : > { %608 = vmatpush.bf16.msrb.mxu1 %v1407_v26 }
 0x119   : > { %v378_v31 = vadd.f32 %v377_v29, %v376_v30  ;;  %v585_v30 = vperm.slane %v1349_v24, 4 }
 0x11b   : > { %v379_v32 = vpack.c.bf16 %v378_v31, %v378_v31 }
 0x11d   : > { %1117 = vmatmul.msk.bf16.vlgmr.msra.gmra.mxu0 %vm345_vm0, %v379_v32 }
 0x19a   : > { %v401_v35 = vpop.f32.mrf.mxu0 }
 0x19b   : > { %v1361_v36 = vadd.f32 %v401_v35, %v382_v34 }
 0x19d   : > { %v425_v37 = vpack.c.bf16 %v1361_v36, %v1361_v36 }
 0x19f   : > { %1126 = vmatmul.msk.bf16.vlgmr.msra.gmra.mxu1 %vm439_vm5, %v425_v37  ;;  %v1265_v37 = vmov 32.0  }
 0x1a2   : > { %v403_v38 = vpop.f32.mrf.mxu0 }
 0x21c   : > { %v452_v40 = vpop.f32.mrf.mxu1 }
 0x21d   : > { %v453_v41 = vadd.f32 %v452_v40, %v426_v39 }
 0x21f   : > { %v456_v42 = vpack.c.bf16 %v453_v41, %v453_v41 }
 0x221   : > { %v458_v43 = vunpack.c.l.b16 %v456_v42 }
 0x223   : > { %v459_v44 = vpack.c.b16 %v458_v43, %v458_v43 }
 0x224   : > { %v454_v45 = vpop.f32.mrf.mxu1 }
 0x225   : > { %521 = vrot.lane.b32.xlu2 %v459_v44, %s1259_s26  ;;  %460 = vrot.lane.b32.xlu1 %v459_v44, %s1260_s27 }
 0x22d   : > { %523 = vrot.lane.b32.xlu1 %v459_v44, %s1261_s28 }
 0x27f   : > { %v522_v50 = vpop.permute.xlu2 %521 }
 0x297   : > { %v461_v46 = vpop.permute.xlu1 %460 }
 0x298   : > { %v466_v47 = vsel %vm345_vm0, %v461_v46, 0 }
 0x299   : > { %475 = vmatpush.bf16.xpose.msra.mxu2 %v466_v47 }
 0x29f   : > { %v524_v48 = vpop.permute.xlu1 %523 }
 0x2a0   : > { %1127 = vmatmul.msk.bf16.vlgmr.msra.gmra.mxu2 %vm345_vm0, %v456_v42  ;;  %v529_v49 = vsel %vm345_vm0, %v524_v48, 0 }
 0x2a1   : > { %538 = vmatpush.bf16.xpose.msrb.mxu0 %v529_v49  ;;  %v1424_v49 = vld [vmem:[%s1571_s6 + $0x8] sm:$0xff] }
 0x2a2   : > { %671 = vmatpush.bf16.msrb.mxu2 %v1424_v49 }
 0x2a8   : > { %1129 = vmatmul.msk.bf16.vlgmr.msrb.gmra.mxu0 %vm345_vm0, %v522_v50  ;;  %v1430_v50 = vld [vmem:[%s1571_s6] sm:$0xff] }
 0x2a9   : > { %672 = vmatpush.bf16.msrb.mxu2 %v1430_v50 }
 0x323   : > { %v477_v52 = vpop.f32.mrf.mxu2 }
 0x324   : > { %v481_v53 = vmul.f32 0.25, %v477_v52 }
 0x325   : > { %v540_v54 = vpop.f32.mrf.mxu0 }
 0x326   : > { %v544_v55 = vmul.f32 0.25, %v540_v54  ;;  %v485_v56 = vadd.f32 %v1381_v51, %v481_v53 }
 0x328   : > { %v487_v57 = vsel %vm486_vm6, %v485_v56, -inf  ;;  %v545_v58 = vadd.f32 %v1381_v51, %v544_v55 }
 0x329   : > { %488 = vmax.xlane.f32.xlu2 %v487_v57 }
 0x32a   : > { %v546_v59 = vsel %vm486_vm6, %v545_v58, -inf }
 0x32b   : > { %v479_v60 = vpop.f32.mrf.mxu2  ;;  %547 = vmax.xlane.f32.xlu0 %v546_v59 }
 0x32d   : > { %v542_v61 = vpop.f32.mrf.mxu0 }
 0x32e   : > { %v644_v61 = vperm.slane %v1349_v24, 5 }
 0x33f   : > { %499 = vrot.lane.b32.xlu0 %v459_v44, %s1262_s12 }
 0x341   : > { %558 = vrot.lane.b32.xlu2 %v459_v44, %s1263_s13 }
 0x39c   : > { %v489_v62 = vpop.xlane.xlu2 %488 }
 0x39d   : > { %v490_v63 = vsub.f32 %v485_v56, %v489_v62 }
 0x39e   : > { %v548_v0 = vpop.xlane.xlu0 %547 }
 0x39f   : > { %v491_v1 = vmul.f32 1.442695, %v490_v63  ;;  %v549_v2 = vsub.f32 %v545_v58, %v548_v0  ;;  %v646_v0 = vperm.slane %v1349_v24, 6 }
 0x3a1   : > { %1220 = vpow2.f32 %v491_v1  ;;  %v550_v3 = vmul.f32 1.442695, %v549_v2 }
 0x3a3   : > { %1222 = vpow2.f32 %v550_v3 }
 0x3a4   : > { %v559_v8 = vpop.permute.xlu2 %558 }
 0x3a5   : > { %v564_v11 = vsel %vm504_vm7, %v559_v8, 0  ;;  %v649_v8 = vperm.slane %v1349_v24, 7 }
 0x3a7   : > { %v1221_v4 = vpop.eup %1220 }
 0x3a8   : > { %v493_v5 = vsel %vm486_vm6, %v1221_v4, 0.0 }
 0x3a9   : > { %v1223_v6 = vpop.eup %1222  ;;  %494 = vadd.xlane.f32.xlu1 %v493_v5  ;;  %v1450_v5 = vld [vmem:[%s1572_s7 + $0x10] sm:$0xff] }
 0x3aa   : > { %v552_v7 = vsel %vm486_vm6, %v1223_v6, 0.0 }
 0x3ab   : > { %553 = vadd.xlane.f32.xlu0 %v552_v7  ;;  %v1462_v7 = vld [vmem:[%s1572_s7] sm:$0xff] }
 0x3b1   : > { %v500_v9 = vpop.permute.xlu0 %499 }
 0x3b2   : > { %v506_v10 = vsel %vm504_vm7, %v500_v9, 0 }
 0x3b3   : > { %515 = vmatpush.bf16.msra.mxu3 %v506_v10 }
 0x3b7   : > { %573 = vmatpush.bf16.msrb.mxu3 %v564_v11 }
 0x41c   : > { %v495_v12 = vpop.xlane.xlu1 %494 }
 0x41d   : > { %1224 = vrcp.f32 %v495_v12 }
 0x41e   : > { %v554_v16 = vpop.xlane.xlu0 %553 }
 0x41f   : > { %1226 = vrcp.f32 %v554_v16 }
 0x420   : > { %1228 = vrcp.f32 %v1265_v37 }
 0x423   : > { %v1225_v13 = vpop.eup %1224 }
 0x424   : > { %v497_v14 = vmul.f32 %v1225_v13, %v1221_v4  ;;  %v1444_v4 = vld [vmem:[%s1572_s7 + $0x18] sm:$0xff] }
 0x425   : > { %v1227_v18 = vpop.eup %1226  ;;  %721 = vmatpush.bf16.msra.mxu0 %v1444_v4 }
 0x426   : > { %v498_v17 = vpack.c.bf16 %v497_v14, %v497_v14  ;;  %v556_v19 = vmul.f32 %v1227_v18, %v1223_v6  ;;  %v1229_v38 = vpop.eup %1228  ;;  %v1456_v6 = vld [vmem:[%s1572_s7 + $0x8] sm:$0xff] }
 0x427   : > { %v619_v40 = vmul.f32 32.0, %v1229_v38  ;;  %vm623_vm8 = vweird.f32 %v1229_v38 }
 0x428   : > { %1128 = vmatmul.msk.bf16.vlgmr.msra.gmra.mxu3 %vm486_vm6, %v498_v17  ;;  %v557_v20 = vpack.c.bf16 %v556_v19, %v556_v19 }
 0x429   : > { %767 = vmatpush.bf16.msra.mxu3 %v1343_v15  ;;  %v620_v41 = vsub.f32 1.0, %v619_v40  ;;  %722 = vmatpush.bf16.msra.mxu0 %v1450_v5 }
 0x42b   : > { %v621_v42 = vmul.f32 %v1229_v38, %v620_v41 }
 0x42d   : > { %768 = vmatpush.bf16.msra.mxu3 %v1357_v33  ;;  %v622_v43 = vadd.f32 %v1229_v38, %v621_v42  ;;  %723 = vmatpush.bf16.msra.mxu0 %v1456_v6 }
 0x42f   : > { %v1417_v44 = vsel %vm623_vm8, %v1229_v38, %v622_v43 }
 0x431   : > { %724 = vmatpush.bf16.msra.mxu0 %v1462_v7 }
 0x438   : > { %1130 = vmatmul.msk.bf16.vlgmr.msrb.gmra.mxu3 %vm486_vm6, %v557_v20 }
 0x4ab   : > { %v517_v22 = vpop.f32.mrf.mxu3 }
 0x4b3   : > { %v519_v23 = vpop.f32.mrf.mxu3 }
 0x4bb   : > { %v575_v25 = vpop.f32.mrf.mxu3 }
 0x4bc   : > { %580 = vrot.lane.b32.xlu1 %v575_v25, %s1264_s16  ;;  %v1472_v25 = vld [vmem:[%s1567_s2 + $0x8] sm:$0xf] }
 0x4c3   : > { %v577_v15 = vpop.f32.mrf.mxu3 }
 0x4c4   : > { %v688_v15 = vperm.slane %v1472_v25, 0 }
 0x52e   : > { %v581_v27 = vpop.permute.xlu1 %580 }
 0x52f   : > { %v583_v28 = vsel %vm345_vm0, %v517_v22, %v581_v27 }
 0x530   : > { %v584_v29 = vpack.c.bf16 %v583_v28, %v583_v28 }
 0x532   : > { %1139 = vmatmul.msk.bf16.vlgmr.msrb.gmra.mxu1 %vm439_vm5, %v584_v29 }
 0x5af   : > { %v610_v31 = vpop.f32.mrf.mxu1 }
 0x5b0   : > { %v611_v32 = vadd.f32 %v610_v31, %v585_v30 }
 0x5b2   : > { %v614_v33 = vadd.f32 %v611_v32, %v1361_v36 }
 0x5b4   : > { %v615_v34 = vsel %vm439_vm5, %v614_v33, 0.0 }
 0x5b5   : > { %616 = vadd.xlane.f32.xlu2 %v615_v34 }
 0x5b7   : > { %v612_v35 = vpop.f32.mrf.mxu1 }
 0x628   : > { %v617_v45 = vpop.xlane.xlu2 %616 }
 0x629   : > { %v625_v46 = vmul.f32 %v1417_v44, %v617_v45 }
 0x62b   : > { %v626_v47 = vsub.f32 %v614_v33, %v625_v46 }
 0x62d   : > { %v627_v48 = vmul.f32 %v626_v47, %v626_v47 }
 0x62f   : > { %v628_v36 = vsel %vm439_vm5, %v627_v48, 0.0 }
 0x630   : > { %629 = vadd.xlane.f32.xlu1 %v628_v36 }
 0x6a3   : > { %v630_v52 = vpop.xlane.xlu1 %629 }
 0x6a4   : > { %v631_v53 = vmul.f32 %v630_v52, %v1417_v44  ;;  %v753_v52 = vperm.slane %v1472_v25, 1 }
 0x6a6   : > { %v632_v54 = vadd.f32 1e-12, %v631_v53 }
 0x6a8   : > { %1230 = vrsqrt.f32 %v632_v54  ;;  %vm639_vm10 = vweird.f32 %v632_v54 }
 0x6ae   : > { %v1231_v55 = vpop.eup %1230 }
 0x6af   : > { %v634_v56 = vmul.f32 %v1231_v55, %v632_v54  ;;  %vm640_vm9 = vweird.f32 %v1231_v55  ;;  %v755_v54 = vperm.slane %v1472_v25, 2 }
 0x6b0   : > { %vm641_vm11 = vmor %vm639_vm10, %vm640_vm9 }
 0x6b1   : > { %v635_v57 = vmul.f32 %v1231_v55, %v634_v56 }
 0x6b3   : > { %v636_v58 = vmul.f32 0.5, %v635_v57 }
 0x6b5   : > { %v637_v59 = vsub.f32 1.5, %v636_v58 }
 0x6b7   : > { %v638_v60 = vmul.f32 %v1231_v55, %v637_v59 }
 0x6b9   : > { %v642_v62 = vsel %vm641_vm11, %v1231_v55, %v638_v60 }
 0x6ba   : > { %v643_v63 = vmul.f32 %v642_v62, %v626_v47 }
 0x6bc   : > { %v645_v1 = vmul.f32 %v644_v61, %v643_v63 }
 0x6be   : > { %v647_v2 = vadd.f32 %v646_v0, %v645_v1 }
 0x6c0   : > { %v648_v3 = vpack.c.bf16 %v647_v2, %v647_v2 }
 0x6c2   : > { %1148 = vmatmul.msk.bf16.vlgmr.msrb.gmra.mxu2 %vm439_vm5, %v648_v3 }
 0x745   : > { %v674_v9 = vpop.f32.mrf.mxu2 }
 0x746   : > { %v675_v10 = vadd.f32 %v674_v9, %v649_v8 }
 0x748   : > { %v679_v11 = vmul.f32 0.044715, %v675_v10  ;;  %v678_v19 = vmul.f32 0.5, %v675_v10 }
 0x74a   : > { %v680_v12 = vmul.f32 %v679_v11, %v675_v10 }
 0x74c   : > { %v681_v13 = vmul.f32 %v680_v12, %v675_v10 }
 0x74d   : > { %v676_v14 = vpop.f32.mrf.mxu2 }
 0x74e   : > { %v682_v16 = vadd.f32 %v681_v13, %v675_v10 }
 0x750   : > { %v683_v17 = vmul.f32 0.7978846, %v682_v16 }
 0x752   : > { %1232 = vtanh.f32 %v683_v17 }
 0x758   : > { %v1233_v18 = vpop.eup %1232 }
 0x759   : > { %v685_v20 = vadd.f32 1.0, %v1233_v18 }
 0x75b   : > { %v686_v22 = vmul.f32 %v685_v20, %v678_v19 }
 0x75d   : > { %v687_v23 = vpack.c.bf16 %v686_v22, %v686_v22 }
 0x75f   : > { %1165 = vmatmul.msk.bf16.vlgmr.msra.gmra.mxu0 %vm713_vm12, %v687_v23 }
 0x7dc   : > { %v726_v27 = vpop.f32.mrf.mxu0 }
 0x7dd   : > { %v727_v28 = vadd.f32 %v726_v27, %v688_v15 }
 0x7df   : > { %v730_v29 = vadd.f32 %v727_v28, %v647_v2 }
 0x7e1   : > { %v731_v31 = vsel %vm439_vm5, %v730_v29, 0.0 }
 0x7e2   : > { %732 = vadd.xlane.f32.xlu0 %v731_v31 }
 0x7e4   : > { %v728_v32 = vpop.f32.mrf.mxu0 }
 0x855   : > { %v733_v33 = vpop.xlane.xlu0 %732 }
 0x856   : > { %v734_v34 = vmul.f32 %v733_v33, %v1417_v44 }
 0x858   : > { %v735_v35 = vsub.f32 %v730_v29, %v734_v34 }
 0x85a   : > { %v736_v37 = vmul.f32 %v735_v35, %v735_v35 }
 0x85c   : > { %v737_v38 = vsel %vm439_vm5, %v736_v37, 0.0 }
 0x85d   : > { %738 = vadd.xlane.f32.xlu0 %v737_v38 }
 0x8d0   : > { %v739_v40 = vpop.xlane.xlu0 %738 }
 0x8d1   : > { %v740_v41 = vmul.f32 %v739_v40, %v1417_v44 }
 0x8d3   : > { %v741_v42 = vadd.f32 1e-12, %v740_v41 }
 0x8d5   : > { %1234 = vrsqrt.f32 %v741_v42  ;;  %vm748_vm14 = vweird.f32 %v741_v42 }
 0x8db   : > { %v1235_v43 = vpop.eup %1234 }
 0x8dc   : > { %v743_v45 = vmul.f32 %v1235_v43, %v741_v42  ;;  %vm749_vm13 = vweird.f32 %v1235_v43 }
 0x8dd   : > { %vm750_vm15 = vmor %vm748_vm14, %vm749_vm13 }
 0x8de   : > { %v744_v46 = vmul.f32 %v1235_v43, %v743_v45 }
 0x8e0   : > { %v745_v47 = vmul.f32 0.5, %v744_v46 }
 0x8e2   : > { %v746_v48 = vsub.f32 1.5, %v745_v47 }
 0x8e4   : > { %v747_v36 = vmul.f32 %v1235_v43, %v746_v48 }
 0x8e6   : > { %v751_v53 = vsel %vm750_vm15, %v1235_v43, %v747_v36 }
 0x8e7   : > { %v752_v55 = vmul.f32 %v751_v53, %v735_v35 }
 0x8e9   : > { %v754_v56 = vmul.f32 %v753_v52, %v752_v55 }
 0x8eb   : > { %v1487_v57 = vadd.f32 %v755_v54, %v754_v56 }
 0x8ed   : > { %v757_v58 = vpack.c.bf16 %v1487_v57, %v1487_v57 }
 0x8ef   : > { %1166 = vmatmul.msk.bf16.vlgmr.msra.gmra.mxu3 %vm439_vm5, %v757_v58 }
 0x972   : > { %v770_v59 = vpop.f32.mrf.mxu3 }
 0x973   : > { %v771_v60 = vadd.f32 %v770_v59, %v426_v39 }
 0x975   : > { %v774_v62 = vpack.c.bf16 %v771_v60, %v771_v60 }
 0x977   : > { %v776_v63 = vunpack.c.l.b16 %v774_v62 }
 0x979   : > { %v777_v1 = vpack.c.b16 %v776_v63, %v776_v63 }
 0x97a   : > { %v772_v2 = vpop.f32.mrf.mxu3 }
 0x97b   : > { %834 = vrot.lane.b32.xlu2 %v777_v1, %s1259_s26  ;;  %836 = vrot.lane.b32.xlu0 %v777_v1, %s1261_s28 }
 0x983   : > { %871 = vrot.lane.b32.xlu2 %v777_v1, %s1263_s13  ;;  %778 = vrot.lane.b32.xlu0 %v777_v1, %s1260_s27  ;;  %s1266_s13 = smov 32  }
 0x98b   : > { %813 = vrot.lane.b32.xlu2 %v777_v1, %s1262_s12 }
 0x9d5   : > { %v835_v3 = vpop.permute.xlu2 %834 }
 0x9dd   : > { %v872_v9 = vpop.permute.xlu2 %871 }
 0x9de   : > { %v877_v10 = vsel %vm504_vm7, %v872_v9, 0 }
 0x9df   : > { %886 = vmatpush.bf16.msrb.mxu3 %v877_v10 }
 0x9e5   : > { %v814_v39 = vpop.permute.xlu2 %813 }
 0x9e6   : > { %v819_v11 = vsel %vm504_vm7, %v814_v39, 0  ;;  %vm1048_vm7 = vcmask 293888  }
 0x9e7   : > { %828 = vmatpush.bf16.msra.mxu2 %v819_v11 }
 0x9eb   : > { %949 = vmatpush.bf16.msrb.mxu2 %v1424_v49 }
 0x9ed   : > { %v837_v12 = vpop.permute.xlu0 %836 }
 0x9ee   : > { %v842_v13 = vsel %vm345_vm0, %v837_v12, 0 }
 0x9ef   : > { %950 = vmatpush.bf16.msrb.mxu2 %v1430_v50  ;;  %851 = vmatpush.bf16.xpose.msrb.mxu0 %v842_v13 }
 0x9f5   : > { %v779_v14 = vpop.permute.xlu0 %778 }
 0x9f6   : > { %v784_v16 = vsel %vm345_vm0, %v779_v14, 0  ;;  %1169 = vmatmul.msk.bf16.vlgmr.msrb.gmra.mxu0 %vm345_vm0, %v835_v3 }
 0x9f7   : > { %973 = vmatpush.bf16.msra.mxu0 %v1444_v4  ;;  %793 = vmatpush.bf16.xpose.msra.mxu1 %v784_v16 }
 0x9fb   : > { %974 = vmatpush.bf16.msra.mxu0 %v1450_v5 }
 0x9fe   : > { %1167 = vmatmul.msk.bf16.vlgmr.msra.gmra.mxu1 %vm345_vm0, %v774_v62 }
 0x9ff   : > { %907 = vmatpush.bf16.msrb.mxu1 %v1400_v21  ;;  %975 = vmatpush.bf16.msra.mxu0 %v1456_v6 }
 0xa03   : > { %908 = vmatpush.bf16.msrb.mxu1 %v1407_v26  ;;  %976 = vmatpush.bf16.msra.mxu0 %v1462_v7 }
 0xa73   : > { %v853_v49 = vpop.f32.mrf.mxu0 }
 0xa74   : > { %v857_v50 = vmul.f32 0.25, %v853_v49 }
 0xa76   : > { %v858_v4 = vadd.f32 %v1381_v51, %v857_v50 }
 0xa78   : > { %v859_v5 = vsel %vm486_vm6, %v858_v4, -inf }
 0xa79   : > { %860 = vmax.xlane.f32.xlu1 %v859_v5 }
 0xa7b   : > { %v795_v17 = vpop.f32.mrf.mxu1  ;;  %v855_v18 = vpop.f32.mrf.mxu0 }
 0xa7c   : > { %v799_v19 = vmul.f32 0.25, %v795_v17 }
 0xa7e   : > { %v800_v21 = vadd.f32 %v1381_v51, %v799_v19 }
 0xa80   : > { %v801_v6 = vsel %vm486_vm6, %v800_v21, -inf }
 0xa81   : > { %802 = vmax.xlane.f32.xlu0 %v801_v6 }
 0xa83   : > { %v797_v26 = vpop.f32.mrf.mxu1 }
 0xaec   : > { %v861_v20 = vpop.xlane.xlu1 %860 }
 0xaed   : > { %v862_v7 = vsub.f32 %v858_v4, %v861_v20 }
 0xaef   : > { %v863_v22 = vmul.f32 1.442695, %v862_v7 }
 0xaf1   : > { %1236 = vpow2.f32 %v863_v22 }
 0xaf4   : > { %v803_v23 = vpop.xlane.xlu0 %802 }
 0xaf5   : > { %v804_v27 = vsub.f32 %v800_v21, %v803_v23 }
 0xaf7   : > { %v1237_v28 = vpop.eup %1236  ;;  %v805_v29 = vmul.f32 1.442695, %v804_v27 }
 0xaf8   : > { %v865_v31 = vsel %vm486_vm6, %v1237_v28, 0.0 }
 0xaf9   : > { %1238 = vpow2.f32 %v805_v29  ;;  %866 = vadd.xlane.f32.xlu1 %v865_v31 }
 0xaff   : > { %v1239_v32 = vpop.eup %1238 }
 0xb00   : > { %v807_v33 = vsel %vm486_vm6, %v1239_v32, 0.0 }
 0xb01   : > { %808 = vadd.xlane.f32.xlu1 %v807_v33 }
 0xb6c   : > { %v867_v51 = vpop.xlane.xlu1 %866 }
 0xb6d   : > { %1240 = vrcp.f32 %v867_v51 }
 0xb73   : > { %v1241_v34 = vpop.eup %1240 }
 0xb74   : > { %v869_v35 = vmul.f32 %v1241_v34, %v1237_v28  ;;  %v809_v37 = vpop.xlane.xlu1 %808 }
 0xb75   : > { %1242 = vrcp.f32 %v809_v37  ;;  %v1197_v37 = vld [vmem:[%s1573_s8 + $0x8] sm:$0xff] }
 0xb76   : > { %v870_v38 = vpack.c.bf16 %v869_v35, %v869_v35  ;;  %1036 = vmatpush.bf16.msra.mxu3 %v1197_v37 }
 0xb78   : > { %1170 = vmatmul.msk.bf16.vlgmr.msrb.gmra.mxu3 %vm486_vm6, %v870_v38 }
 0xb7b   : > { %v1243_v40 = vpop.eup %1242 }
 0xb7c   : > { %v811_v41 = vmul.f32 %v1243_v40, %v1239_v32 }
 0xb7e   : > { %v812_v42 = vpack.c.bf16 %v811_v41, %v811_v41 }
 0xb80   : > { %1168 = vmatmul.msk.bf16.vlgmr.msra.gmra.mxu2 %vm486_vm6, %v812_v42 }
 0xbfb   : > { %v888_v43 = vpop.f32.mrf.mxu3 }
 0xbfc   : > { %893 = vrot.lane.b32.xlu1 %v888_v43, %s1264_s16 }
 0xc03   : > { %v830_v45 = vpop.f32.mrf.mxu2  ;;  %v890_v46 = vpop.f32.mrf.mxu3 }
 0xc0b   : > { %v832_v47 = vpop.f32.mrf.mxu2 }
 0xc6e   : > { %v894_v48 = vpop.permute.xlu1 %893 }
 0xc6f   : > { %v896_v36 = vsel %vm345_vm0, %v830_v45, %v894_v48 }
 0xc70   : > { %v897_v53 = vpack.c.bf16 %v896_v36, %v896_v36 }
 0xc72   : > { %1171 = vmatmul.msk.bf16.vlgmr.msrb.gmra.mxu1 %vm439_vm5, %v897_v53 }
 0xcef   : > { %v910_v55 = vpop.f32.mrf.mxu1 }
 0xcf0   : > { %v911_v56 = vadd.f32 %v910_v55, %v585_v30 }
 0xcf2   : > { %v914_v58 = vadd.f32 %v911_v56, %v1487_v57 }
 0xcf4   : > { %v915_v59 = vsel %vm439_vm5, %v914_v58, 0.0 }
 0xcf5   : > { %916 = vadd.xlane.f32.xlu2 %v915_v59 }
 0xcf7   : > { %v912_v60 = vpop.f32.mrf.mxu1 }
 0xd68   : > { %v917_v62 = vpop.xlane.xlu2 %916 }
 0xd69   : > { %v918_v63 = vmul.f32 %v917_v62, %v1417_v44 }
 0xd6b   : > { %v919_v1 = vsub.f32 %v914_v58, %v918_v63  ;;  %v1025_v58 = vrot.slane %v1472_v25, 3 }
 0xd6d   : > { %v920_v2 = vmul.f32 %v919_v1, %v919_v1 }
 0xd6f   : > { %v921_v3 = vsel %vm439_vm5, %v920_v2, 0.0 }
 0xd70   : > { %922 = vadd.xlane.f32.xlu0 %v921_v3 }
 0xde3   : > { %v923_v9 = vpop.xlane.xlu0 %922 }
 0xde4   : > { %v924_v10 = vmul.f32 %v923_v9, %v1417_v44 }
 0xde6   : > { %v925_v39 = vadd.f32 1e-12, %v924_v10 }
 0xde8   : > { %1244 = vrsqrt.f32 %v925_v39  ;;  %vm932_vm1 = vweird.f32 %v925_v39 }
 0xdee   : > { %v1245_v30 = vpop.eup %1244 }
 0xdef   : > { %v927_v11 = vmul.f32 %v1245_v30, %v925_v39  ;;  %vm933_vm0 = vweird.f32 %v1245_v30 }
 0xdf0   : > { %vm934_vm2 = vmor %vm932_vm1, %vm933_vm0 }
 0xdf1   : > { %v928_v57 = vmul.f32 %v1245_v30, %v927_v11 }
 0xdf3   : > { %v929_v12 = vmul.f32 0.5, %v928_v57 }
 0xdf5   : > { %v930_v13 = vsub.f32 1.5, %v929_v12 }
 0xdf7   : > { %v931_v14 = vmul.f32 %v1245_v30, %v930_v13 }
 0xdf9   : > { %v935_v16 = vsel %vm934_vm2, %v1245_v30, %v931_v14 }
 0xdfa   : > { %v936_v49 = vmul.f32 %v935_v16, %v919_v1 }
 0xdfc   : > { %v937_v50 = vmul.f32 %v936_v49, %v644_v61 }
 0xdfe   : > { %v938_v4 = vadd.f32 %v937_v50, %v646_v0 }
 0xe00   : > { %v939_v5 = vpack.c.bf16 %v938_v4, %v938_v4 }
 0xe02   : > { %1172 = vmatmul.msk.bf16.vlgmr.msrb.gmra.mxu2 %vm439_vm5, %v939_v5 }
 0xe85   : > { %v952_v17 = vpop.f32.mrf.mxu2 }
 0xe86   : > { %v953_v18 = vadd.f32 %v952_v17, %v649_v8 }
 0xe88   : > { %v957_v19 = vmul.f32 0.044715, %v953_v18  ;;  %v956_v23 = vmul.f32 0.5, %v953_v18 }
 0xe8a   : > { %v958_v21 = vmul.f32 %v957_v19, %v953_v18 }
 0xe8c   : > { %v959_v6 = vmul.f32 %v958_v21, %v953_v18 }
 0xe8d   : > { %v954_v26 = vpop.f32.mrf.mxu2 }
 0xe8e   : > { %v960_v20 = vadd.f32 %v959_v6, %v953_v18 }
 0xe90   : > { %v961_v7 = vmul.f32 0.7978846, %v960_v20 }
 0xe92   : > { %1246 = vtanh.f32 %v961_v7 }
 0xe98   : > { %v1247_v22 = vpop.eup %1246 }
 0xe99   : > { %v963_v61 = vadd.f32 1.0, %v1247_v22 }
 0xe9b   : > { %v964_v27 = vmul.f32 %v963_v61, %v956_v23 }
 0xe9d   : > { %v965_v28 = vpack.c.bf16 %v964_v27, %v964_v27 }
 0xe9f   : > { %1173 = vmatmul.msk.bf16.vlgmr.msra.gmra.mxu0 %vm713_vm12, %v965_v28 }
 0xf1c   : > { %v978_v0 = vpop.f32.mrf.mxu0 }
 0xf1d   : > { %v979_v29 = vadd.f32 %v978_v0, %v688_v15  ;;  %v1196_v15 = vld [vmem:[%s1573_s8] sm:$0xff] }
 0xf1e   : > { %1037 = vmatpush.bf16.msra.mxu3 %v1196_v15 }
 0xf1f   : > { %v982_v24 = vadd.f32 %v979_v29, %v938_v4 }
 0xf21   : > { %v983_v8 = vsel %vm439_vm5, %v982_v24, 0.0 }
 0xf22   : > { %984 = vadd.xlane.f32.xlu1 %v983_v8 }
 0xf24   : > { %v980_v31 = vpop.f32.mrf.mxu0 }
 0xf95   : > { %v985_v32 = vpop.xlane.xlu1 %984 }
 0xf96   : > { %v986_v33 = vmul.f32 %v985_v32, %v1417_v44 }
 0xf98   : > { %v987_v51 = vsub.f32 %v982_v24, %v986_v33 }
 0xf9a   : > { %v988_v34 = vmul.f32 %v987_v51, %v987_v51 }
 0xf9c   : > { %v989_v35 = vsel %vm439_vm5, %v988_v34, 0.0 }
 0xf9d   : > { %990 = vadd.xlane.f32.xlu0 %v989_v35 }
0x1010   : > { %v991_v38 = vpop.xlane.xlu0 %990 }
0x1011   : > { %v992_v40 = vmul.f32 %v991_v38, %v1417_v44 }
0x1013   : > { %v993_v41 = vadd.f32 1e-12, %v992_v40 }
0x1015   : > { %1248 = vrsqrt.f32 %v993_v41  ;;  %vm1000_vm4 = vweird.f32 %v993_v41 }
0x101b   : > { %v1249_v42 = vpop.eup %1248 }
0x101c   : > { %v995_v43 = vmul.f32 %v1249_v42, %v993_v41  ;;  %vm1001_vm3 = vweird.f32 %v1249_v42 }
0x101d   : > { %vm1002_vm6 = vmor %vm1000_vm4, %vm1001_vm3 }
0x101e   : > { %v996_v45 = vmul.f32 %v1249_v42, %v995_v43 }
0x1020   : > { %v997_v46 = vmul.f32 0.5, %v996_v45 }
0x1022   : > { %v998_v47 = vsub.f32 1.5, %v997_v46 }
0x1024   : > { %v999_v48 = vmul.f32 %v1249_v42, %v998_v47 }
0x1026   : > { %v1003_v36 = vsel %vm1002_vm6, %v1249_v42, %v999_v48 }
0x1027   : > { %v1004_v53 = vmul.f32 %v1003_v36, %v987_v51 }
0x1029   : > { %v1005_v55 = vmul.f32 %v1004_v53, %v753_v52 }
0x102b   : > { %v1006_v44 = vadd.f32 %v1005_v55, %v755_v54 }
0x102d   : > { %v1007_v56 = vpack.c.bf16 %v1006_v44, %v1006_v44 }
0x102f   : > { %1182 = vmatmul.msk.bf16.vlgmr.msra.gmra.mxu3 %vm439_vm5, %v1007_v56 }
0x10b2   : > { %v1039_v59 = vpop.f32.mrf.mxu3 }
0x10b3   : > { %v1040_v60 = vadd.f32 %v1039_v59, %v1025_v58 }
0x10b5   : > { %1044 = vrot.lane.b32.xlu0 %v1040_v60, %s1266_s13 }
0x10ba   : > { %v1041_v62 = vpop.f32.mrf.mxu3 }
0x1127   : > { %v1045_v63 = vpop.permute.xlu0 %1044 }
0x1128   : > { %v1047_v52 = vsel %vm439_vm5, %v1006_v44, %v1045_v63 }
0x1129   : > { %v1049_v1 = vsel %vm1048_vm7, %v1047_v52, 0.0 }
0x112a   : > { %1050 = vst [vmem:[%s339_s21] sm:$0x1] %v1049_v1 }
0x112b PF: > { %s19_s30 = sadd.s32 1, %s1256_s30  }
0x112c   : > { %p16_p4 = scmp.ge.s32.totalorder %s19_s30, 4  }
0x112e   :  { %18 = sbr.rel (!%p16_p4) target bundleno = 1 (0x1), region = 89 }

</bundles_post_ra>
